<compile_context>
chip_gen: v7x
topology: tpu7x:2x2x1
jax: 0.10.0
libtpu: 0.0.40
codegen_flags: <defaults>
</compile_context>

<pallas_src>
import jax
import jax.numpy as jnp
from jax.experimental import pallas as pl
from jax.experimental.pallas import tpu as pltpu


_STEP_OVERHEAD_ROWS = 64        # ~0.35 us per grid step, expressed in row-equivalents
_STATIC_UNROLL_MAX_LAYERS = 4   # beyond this, fori_loop bounds vreg live ranges


def _round_up(x, m):
    return (x + m - 1) // m * m


def _pad_to(a, shape):
    return jnp.pad(a, [(0, t - s) for s, t in zip(a.shape, shape)])


def _const_spec(shape):
    """BlockSpec for a grid-invariant operand; single-buffered when supported."""
    index_map = lambda i: (0,) * len(shape)
    try:
        return pl.BlockSpec(shape, index_map, pipeline_mode=pl.Buffered(1))
    except Exception:  # older JAX without pipeline_mode / Buffered(1) support
        return pl.BlockSpec(shape, index_map)


def _vmem_capacity_bytes():
    """Physical VMEM per core (128 MiB v5e/v6e, 64 MiB v7x); conservative default."""
    try:
        cap = int(getattr(pltpu.get_tpu_info(), "vmem_capacity_bytes", 0) or 0)
        if cap > 0:
            return cap
    except Exception:
        pass
    return 64 << 20


def _select_row_tile(M, n_layers, L_pad, P_pad, vmem_cap, *, max_rb=512):
    """Pick row tile rb (multiple of 16 for bf16 sublane packing) and padded rows.

    Cost model: padded rows of compute + per-grid-step overhead, with a penalty on
    1-step grids (the single 'parallel' axis is how v7x shards work across its two
    TensorCores). Candidates must fit a ~70%-of-physical-VMEM budget.
    """
    budget = (vmem_cap * 7) // 10
    # Constants budgeted as double-buffered (conservative if Buffered(1) applies).
    const_bytes = 2 * ((n_layers * L_pad * L_pad + L_pad * P_pad) * 2
                       + (n_layers + 1) * L_pad * 4 + P_pad * 4)

    def need(rb):
        # double-buffered in/out f32 activation tiles + f32 accumulator scratch
        return const_bytes + 2 * rb * (L_pad + P_pad) * 4 + rb * L_pad * 4

    m16 = max(_round_up(M, 16), 16)
    rb_cap = min(m16, max(max_rb, 16))
    cands = sorted({rb for rb in (512, 384, 256, 192, 128, 96, 64, 48, 32, 16, m16)
                    if 16 <= rb <= rb_cap and rb % 16 == 0})
    fitting = [rb for rb in cands if need(rb) <= budget] or [min(cands)]
    # TODO(synk): if even the smallest tile busts the budget (huge n_layers*L_pad^2
    # weight set), stream one layer's weight per step via an extra 'arbitrary' grid
    # axis instead of keeping every layer VMEM-resident.

    def key(rb):
        steps = -(-M // rb)
        cost = (steps * rb + steps * _STEP_OVERHEAD_ROWS) * (1.5 if steps == 1 else 1.0)
        return (cost, -rb)

    rb = min(fitting, key=key)
    steps = -(-M // rb)
    return rb, steps * rb, need(rb)


def _fold_bn_into_linear(params):
    """Eval-mode BN fold: (x*s + t) @ W + b == x @ (diag(s) @ W) + (t @ W + b)."""
    w_fold = params["bn_scale"][:, :, None] * params["w"]                       # f32
    b_fold = jnp.einsum("li,lio->lo", params["bn_shift"], params["w"]) + params["b"]
    return w_fold, b_fold


def _tmixer_kernel(x_ref, w_ref, b_ref, wout_ref, bout_ref, o_ref, acc_ref):
    """One (rb, L_pad) slab of B*C rows: all mixer layers + output projection.

    BatchNorm is pre-folded into w/b, so each layer is one bf16 MXU matmul plus
    bias+ReLU+residual on the VPU; accumulation stays f32.
    """
    n_layers = w_ref.shape[0]

    def layer_step(x, layer):
        y = jnp.dot(x.astype(jnp.bfloat16), w_ref[layer],
                    preferred_element_type=jnp.float32)          # MXU, f32 acc
        return x + jnp.maximum(y + b_ref[layer], 0.0)            # bias+ReLU+residual

    h = x_ref[...].astype(jnp.float32)          # layer 0 reads the input tile directly
    if n_layers > 0:
        acc_ref[...] = layer_step(h, 0)         # acc_ref only ever holds residuals
        if n_layers <= _STATIC_UNROLL_MAX_LAYERS:
            for layer in range(1, n_layers):
                acc_ref[...] = layer_step(acc_ref[...], layer)
        else:
            def body(layer, carry):
                acc_ref[...] = layer_step(acc_ref[...], layer)
                return carry
            jax.lax.fori_loop(1, n_layers, body, 0)
        h = acc_ref[...]
    out = jnp.dot(h.astype(jnp.bfloat16), wout_ref[...],
                  preferred_element_type=jnp.float32)            # Linear(L, P) on MXU
    o_ref[...] = (out + bout_ref[...]).astype(o_ref.dtype)


def tmixer_forward(x, params, *, max_row_block=512):
    """x: (B, in_len, C) float32 -> (B, pred_len, C) float32 (eval-mode forward)."""
    B, L, C = x.shape
    n_layers = params["w"].shape[0]
    P = params["wout"].shape[1]

    # Lane-dense padding of both sequence dims (unmasked stores, full MXU columns).
    L_pad = _round_up(L, 128)
    P_pad = _round_up(P, 128)

    # Fold BN into the per-layer Linear in f32, then zero-pad; matmul operands cast
    # to bf16 (f32 accumulation in-kernel), biases stay f32. Zero padding keeps the
    # padded lanes exactly zero through every layer.
    w_fold, b_fold = _fold_bn_into_linear(params)
    w = _pad_to(w_fold, (n_layers, L_pad, L_pad)).astype(jnp.bfloat16)
    b = _pad_to(b_fold[:, None, :], (n_layers, 1, L_pad))
    wout = _pad_to(params["wout"], (L_pad, P_pad)).astype(jnp.bfloat16)
    bout = _pad_to(params["bout"], (1, P_pad))

    # (B, L, C) -> (B, C, L) -> (B*C, L): sequence dim on lanes for both matmuls.
    # TODO(synk): folding these two HBM layout passes into the kernel (grid over
    # (B, C-tiles) + in-kernel XLU transpose) only pays off for C >= 128; for the
    # typical small-C regime it would shrink MXU N-width / output lane density, so
    # the layout change stays host-side.
    M = B * C
    x2d = jnp.transpose(x, (0, 2, 1)).reshape(M, L)

    vmem_cap = _vmem_capacity_bytes()
    rb, M_pad, vmem_need = _select_row_tile(M, n_layers, L_pad, P_pad, vmem_cap,
                                            max_rb=max_row_block)
    x2d = _pad_to(x2d, (M_pad, L_pad))
    grid = (M_pad // rb,)

    # Scoped VMEM limit from the actual budget (no blanket 2x), capped at ~80% of
    # this generation's physical VMEM (64 MiB v7x / 128 MiB v5e+v6e).
    vmem_limit = max(int(vmem_need * 1.2), 32 << 20)
    vmem_limit = int(min(vmem_limit, max((vmem_cap * 4) // 5, vmem_need)))

    flops = 2 * M_pad * L_pad * (n_layers * L_pad + P_pad) + 3 * M_pad * L_pad * n_layers
    bytes_accessed = (M_pad * L_pad * 4 + M_pad * P_pad * 4
                      + (n_layers * L_pad * L_pad + L_pad * P_pad) * 2
                      + (n_layers + 1) * L_pad * 4 + P_pad * 4)

    out2d = pl.pallas_call(
        _tmixer_kernel,
        out_shape=jax.ShapeDtypeStruct((M_pad, P_pad), x.dtype),
        grid=grid,
        in_specs=[
            pl.BlockSpec((rb, L_pad), lambda i: (i, 0)),   # activation row slab
            _const_spec((n_layers, L_pad, L_pad)),         # BN-folded weights (bf16)
            _const_spec((n_layers, 1, L_pad)),             # BN-folded biases (f32)
            _const_spec((L_pad, P_pad)),                   # output weight (bf16)
            _const_spec((1, P_pad)),                       # output bias (f32)
        ],
        out_specs=pl.BlockSpec((rb, P_pad), lambda i: (i, 0)),
        scratch_shapes=[pltpu.VMEM((rb, L_pad), jnp.float32)],
        compiler_params=pltpu.CompilerParams(
            dimension_semantics=("parallel",),
            vmem_limit_bytes=vmem_limit),
        cost_estimate=pl.CostEstimate(flops=int(flops), transcendentals=0,
                                      bytes_accessed=int(bytes_accessed)),
    )(x2d, w, b, wout, bout)

    out2d = out2d[:M, :P]                                     # drop padding
    return jnp.transpose(out2d.reshape(B, C, P), (0, 2, 1))   # (B, pred_len, C)


def init_params(key, n_layers, in_len, out_len):
    """Deterministic synthetic parameters matching the PyTorch module's shapes."""
    eps = 1e-5
    ks = jax.random.split(key, 8)
    # BatchNorm1d(in_len): weight, bias, running_mean, running_var (per timestep)
    gamma = 1.0 + 0.1 * jax.random.normal(ks[0], (n_layers, in_len), jnp.float32)
    beta = 0.1 * jax.random.normal(ks[1], (n_layers, in_len), jnp.float32)
    running_mean = 0.1 * jax.random.normal(ks[2], (n_layers, in_len), jnp.float32)
    running_var = 1.0 + 0.1 * jax.random.uniform(ks[3], (n_layers, in_len), jnp.float32)
    bn_scale = gamma / jnp.sqrt(running_var + eps)
    bn_shift = beta - running_mean * bn_scale
    # Linear(in_len, in_len) per layer, PyTorch-style uniform init, stored (in, out)
    bound = 1.0 / jnp.sqrt(in_len)
    w = jax.random.uniform(ks[4], (n_layers, in_len, in_len), jnp.float32, -bound, bound)
    b = jax.random.uniform(ks[5], (n_layers, in_len), jnp.float32, -bound, bound)
    # Output Linear(in_len, pred_len), stored pre-transposed as (in_len, pred_len)
    wout = jax.random.uniform(ks[6], (in_len, out_len), jnp.float32, -bound, bound)
    bout = jax.random.uniform(ks[7], (1, out_len), jnp.float32, -bound, bound)
    return dict(bn_scale=bn_scale, bn_shift=bn_shift, w=w, b=b, wout=wout, bout=bout)


def tmixer_ref(x, params):
    """Pure-JAX f32 reference of the PyTorch eval-mode forward (unfused math)."""
    n_layers = params["w"].shape[0]
    for l in range(n_layers):
        y = x * params["bn_scale"][l][None, :, None] + params["bn_shift"][l][None, :, None]
        y = jnp.swapaxes(y, 1, 2)                           # (B, C, L)
        y = jnp.maximum(jnp.dot(y, params["w"][l]) + params["b"][l][None, None, :], 0.0)
        x = x + jnp.swapaxes(y, 1, 2)                       # (B, L, C)
    y = jnp.dot(jnp.swapaxes(x, 1, 2), params["wout"]) + params["bout"][None, :, :]
    return jnp.swapaxes(y, 1, 2)                            # (B, P, C)


def tmixer_ref_matched(x, params):
    """Reference with the same BN-fold + bf16 matmul quantization as the kernel."""
    w_fold, b_fold = _fold_bn_into_linear(params)
    w_bf = w_fold.astype(jnp.bfloat16)
    wout_bf = params["wout"].astype(jnp.bfloat16)
    h = jnp.swapaxes(x, 1, 2)                               # (B, C, L) f32
    for l in range(w_fold.shape[0]):
        y = jnp.dot(h.astype(jnp.bfloat16), w_bf[l], preferred_element_type=jnp.float32)
        h = h + jnp.maximum(y + b_fold[l][None, None, :], 0.0)
    y = jnp.dot(h.astype(jnp.bfloat16), wout_bf, preferred_element_type=jnp.float32)
    y = y + params["bout"][None, :, :]
    return jnp.swapaxes(y, 1, 2)                            # (B, P, C)


if __name__ == "__main__":
    B, C, L, P, n_layers = 2, 4, 16, 8, 2                   # enc_in=4, in_len=16, out_len=8
    key = jax.random.PRNGKey(0)
    kx, kp = jax.random.split(key)
    x = jax.random.normal(kx, (B, L, C), jnp.float32)       # PyTorch layout (B, in_len, enc_in)
    params = init_params(kp, n_layers, L, P)

    out = jax.block_until_ready(jax.jit(tmixer_forward)(x, params))

    ref_matched = tmixer_ref_matched(x, params)             # same quantization as kernel
    ref_f32 = tmixer_ref(x, params)                         # full-precision unfused math
    assert out.shape == (B, P, C), out.shape
    err_m = float(jnp.abs(out - ref_matched).max())
    err_f = float(jnp.abs(out - ref_f32).max())
    assert jnp.allclose(out, ref_matched, atol=3e-3, rtol=3e-3), err_m
    assert jnp.allclose(out, ref_f32, atol=1e-1, rtol=1e-1), err_f
    print("KERNEL_OK")
</pallas_src>

<mosaic_0001>
module attributes {stable_mosaic.version = 11 : i64} {
  func.func @_tmixer_kernel(%arg0: i32, %arg1: memref<16x128xf32, #tpu.memory_space<vmem>>, %arg2: memref<2x128x128xbf16, #tpu.memory_space<vmem>>, %arg3: memref<2x1x128xf32, #tpu.memory_space<vmem>>, %arg4: memref<128x128xbf16, #tpu.memory_space<vmem>>, %arg5: memref<1x128xf32, #tpu.memory_space<vmem>>, %arg6: memref<16x128xf32, #tpu.memory_space<vmem>>, %arg7: memref<16x128xf32, #tpu.memory_space<vmem>>) attributes {dimension_semantics = [#tpu.dimension_semantics<parallel>], iteration_bounds = array<i64: 1>, scalar_prefetch = 0 : i64, scratch_operands = 1 : i64, tpu.core_type = #tpu.core_type<tc>, window_params = [{transform_indices = @transform_0, window_bounds = array<i64: 16, 128>}, {pipeline_mode = #tpu.pipeline_mode<synchronous>, transform_indices = @transform_1, window_bounds = array<i64: 2, 128, 128>}, {pipeline_mode = #tpu.pipeline_mode<synchronous>, transform_indices = @transform_2, window_bounds = array<i64: 2, 1, 128>}, {pipeline_mode = #tpu.pipeline_mode<synchronous>, transform_indices = @transform_3, window_bounds = array<i64: 128, 128>}, {pipeline_mode = #tpu.pipeline_mode<synchronous>, transform_indices = @transform_4, window_bounds = array<i64: 1, 128>}, {transform_indices = @transform_5, window_bounds = array<i64: 16, 128>}]} {
    %c0 = arith.constant 0 : index
    %c0_0 = arith.constant 0 : index
    %0 = vector.load %arg1[%c0, %c0_0] : memref<16x128xf32, #tpu.memory_space<vmem>>, vector<16x128xf32>
    %1 = arith.truncf %0 : vector<16x128xf32> to vector<16x128xbf16>
    %c0_1 = arith.constant 0 : index
    %c0_2 = arith.constant 0 : index
    %c0_3 = arith.constant 0 : index
    %2 = vector.load %arg2[%c0_1, %c0_2, %c0_3] : memref<2x128x128xbf16, #tpu.memory_space<vmem>>, vector<1x128x128xbf16>
    %3 = vector.shape_cast %2 : vector<1x128x128xbf16> to vector<128x128xbf16>
    %cst = arith.constant dense<0.000000e+00> : vector<16x128xf32>
    %4 = tpu.matmul %1, %3, %cst {dimension_numbers = #tpu.dot_dimension_numbers<[1], [0], [0], [1], [0, 0, 1, 1], [], []>} : vector<16x128xbf16>, vector<128x128xbf16>, vector<16x128xf32> -> vector<16x128xf32>
    %c0_4 = arith.constant 0 : index
    %c0_5 = arith.constant 0 : index
    %c0_6 = arith.constant 0 : index
    %5 = vector.load %arg3[%c0_4, %c0_5, %c0_6] : memref<2x1x128xf32, #tpu.memory_space<vmem>>, vector<1x1x128xf32>
    %6 = vector.shape_cast %5 : vector<1x1x128xf32> to vector<1x128xf32>
    %7 = vector.broadcast %6 : vector<1x128xf32> to vector<16x128xf32>
    %8 = arith.addf %4, %7 : vector<16x128xf32>
    %cst_7 = arith.constant 0.000000e+00 : f32
    %9 = vector.broadcast %cst_7 : f32 to vector<16x128xf32>
    %10 = arith.maximumf %8, %9 : vector<16x128xf32>
    %11 = arith.addf %0, %10 : vector<16x128xf32>
    %c0_8 = arith.constant 0 : index
    %c0_9 = arith.constant 0 : index
    %12 = vector.load %arg7[%c0_8, %c0_9] : memref<16x128xf32, #tpu.memory_space<vmem>>, vector<16x128xf32>
    tpu.vector_store %arg7[%c0_8, %c0_9], %11 {strides = array<i32>} : memref<16x128xf32, #tpu.memory_space<vmem>>, vector<16x128xf32>,
    %c0_10 = arith.constant 0 : index
    %c0_11 = arith.constant 0 : index
    %13 = vector.load %arg7[%c0_10, %c0_11] : memref<16x128xf32, #tpu.memory_space<vmem>>, vector<16x128xf32>
    %14 = arith.truncf %13 : vector<16x128xf32> to vector<16x128xbf16>
    %c1 = arith.constant 1 : index
    %c0_12 = arith.constant 0 : index
    %c0_13 = arith.constant 0 : index
    %15 = vector.load %arg2[%c1, %c0_12, %c0_13] : memref<2x128x128xbf16, #tpu.memory_space<vmem>>, vector<1x128x128xbf16>
    %16 = vector.shape_cast %15 : vector<1x128x128xbf16> to vector<128x128xbf16>
    %cst_14 = arith.constant dense<0.000000e+00> : vector<16x128xf32>
    %17 = tpu.matmul %14, %16, %cst_14 {dimension_numbers = #tpu.dot_dimension_numbers<[1], [0], [0], [1], [0, 0, 1, 1], [], []>} : vector<16x128xbf16>, vector<128x128xbf16>, vector<16x128xf32> -> vector<16x128xf32>
    %c1_15 = arith.constant 1 : index
    %c0_16 = arith.constant 0 : index
    %c0_17 = arith.constant 0 : index
    %18 = vector.load %arg3[%c1_15, %c0_16, %c0_17] : memref<2x1x128xf32, #tpu.memory_space<vmem>>, vector<1x1x128xf32>
    %19 = vector.shape_cast %18 : vector<1x1x128xf32> to vector<1x128xf32>
    %20 = vector.broadcast %19 : vector<1x128xf32> to vector<16x128xf32>
    %21 = arith.addf %17, %20 : vector<16x128xf32>
    %cst_18 = arith.constant 0.000000e+00 : f32
    %22 = vector.broadcast %cst_18 : f32 to vector<16x128xf32>
    %23 = arith.maximumf %21, %22 : vector<16x128xf32>
    %24 = arith.addf %13, %23 : vector<16x128xf32>
    %c0_19 = arith.constant 0 : index
    %c0_20 = arith.constant 0 : index
    %25 = vector.load %arg7[%c0_19, %c0_20] : memref<16x128xf32, #tpu.memory_space<vmem>>, vector<16x128xf32>
    tpu.vector_store %arg7[%c0_19, %c0_20], %24 {strides = array<i32>} : memref<16x128xf32, #tpu.memory_space<vmem>>, vector<16x128xf32>,
    %c0_21 = arith.constant 0 : index
    %c0_22 = arith.constant 0 : index
    %26 = vector.load %arg7[%c0_21, %c0_22] : memref<16x128xf32, #tpu.memory_space<vmem>>, vector<16x128xf32>
    %27 = arith.truncf %26 : vector<16x128xf32> to vector<16x128xbf16>
    %c0_23 = arith.constant 0 : index
    %c0_24 = arith.constant 0 : index
    %28 = vector.load %arg4[%c0_23, %c0_24] : memref<128x128xbf16, #tpu.memory_space<vmem>>, vector<128x128xbf16>
    %cst_25 = arith.constant dense<0.000000e+00> : vector<16x128xf32>
    %29 = tpu.matmul %27, %28, %cst_25 {dimension_numbers = #tpu.dot_dimension_numbers<[1], [0], [0], [1], [0, 0, 1, 1], [], []>} : vector<16x128xbf16>, vector<128x128xbf16>, vector<16x128xf32> -> vector<16x128xf32>
    %c0_26 = arith.constant 0 : index
    %c0_27 = arith.constant 0 : index
    %30 = vector.load %arg5[%c0_26, %c0_27] : memref<1x128xf32, #tpu.memory_space<vmem>>, vector<1x128xf32>
    %31 = vector.broadcast %30 : vector<1x128xf32> to vector<16x128xf32>
    %32 = arith.addf %29, %31 : vector<16x128xf32>
    %c0_28 = arith.constant 0 : index
    %c0_29 = arith.constant 0 : index
    %33 = vector.load %arg6[%c0_28, %c0_29] : memref<16x128xf32, #tpu.memory_space<vmem>>, vector<16x128xf32>
    tpu.vector_store %arg6[%c0_28, %c0_29], %32 {strides = array<i32>} : memref<16x128xf32, #tpu.memory_space<vmem>>, vector<16x128xf32>,
    return
  }
  func.func @transform_0(%arg0: i32) -> (i32, i32) {
    %c0_i32 = arith.constant 0 : i32
    %c0_i32_0 = arith.constant 0 : i32
    return %arg0, %c0_i32 : i32, i32
  }
  func.func @transform_1(%arg0: i32) -> (i32, i32, i32) {
    %c0_i32 = arith.constant 0 : i32
    %c0_i32_0 = arith.constant 0 : i32
    %c0_i32_1 = arith.constant 0 : i32
    %c0_i32_2 = arith.constant 0 : i32
    return %c0_i32, %c0_i32_0, %c0_i32_1 : i32, i32, i32
  }
  func.func @transform_2(%arg0: i32) -> (i32, i32, i32) {
    %c0_i32 = arith.constant 0 : i32
    %c0_i32_0 = arith.constant 0 : i32
    %c0_i32_1 = arith.constant 0 : i32
    %c0_i32_2 = arith.constant 0 : i32
    return %c0_i32, %c0_i32_0, %c0_i32_1 : i32, i32, i32
  }
  func.func @transform_3(%arg0: i32) -> (i32, i32) {
    %c0_i32 = arith.constant 0 : i32
    %c0_i32_0 = arith.constant 0 : i32
    %c0_i32_1 = arith.constant 0 : i32
    return %c0_i32, %c0_i32_0 : i32, i32
  }
  func.func @transform_4(%arg0: i32) -> (i32, i32) {
    %c0_i32 = arith.constant 0 : i32
    %c0_i32_0 = arith.constant 0 : i32
    %c0_i32_1 = arith.constant 0 : i32
    return %c0_i32, %c0_i32_0 : i32, i32
  }
  func.func @transform_5(%arg0: i32) -> (i32, i32) {
    %c0_i32 = arith.constant 0 : i32
    %c0_i32_0 = arith.constant 0 : i32
    return %arg0, %c0_i32 : i32, i32
  }
}

</mosaic_0001>

<bundles_post_ra>
// kernel: tmixer_forward.1
= control target key start
LH: loop header
LB: loop body
LE: loop exit
PB: predicated region body
PF: predicated region fallthrough
CT: control target
= control target key end

     0   :  { %v543_v0 = vmov 0.0   ;;  %vm544_vm0 = vmmov 0   ;;  %s698_s1 = inlined_call_operand.vmem [shape: bf16[2,128,128], index: 1, kind: input, shape index: {}]   ;;  %s699_s0 = inlined_call_operand.vmem [shape: f32[16,128], index: 0, kind: input, shape index: {}]   ;;  %s700_s3 = inlined_call_operand.vmem [shape: bf16[128,128], index: 3, kind: input, shape index: {}]   ;;  %s701_s2 = inlined_call_operand.vmem [shape: f32[2,1,128], index: 2, kind: input, shape index: {}]   ;;  %s702_s4 = inlined_call_operand.vmem [shape: f32[1,128], index: 4, kind: input, shape index: {}]   ;;  %s703_s5 = inlined_call_operand.vmem [shape: f32[16,128], index: 5, kind: output, shape index: {}]  }
   0x1   :  { %457 = vmatprep.subr.bf16.mxu0 %v543_v0  ;;  %v519_v1 = vld [vmem:[%s698_s1] sm:$0xff]   ;;  %473 = vmatprep.mubr.msk.bf16.mxu0 %vm544_vm0, %v543_v0  ;;  %v520_v2 = vld [vmem:[%s698_s1 + $0x8] sm:$0xff]   ;;  %v521_v3 = vld [vmem:[%s698_s1 + $0x10] sm:$0xff]  }
   0x2   :  { %477 = vmatprep.subr.bf16.mxu1 %v543_v0  ;;  %493 = vmatprep.mubr.msk.bf16.mxu1 %vm544_vm0, %v543_v0  ;;  %v527_v4 = vld [vmem:[%s698_s1 + $0x40] sm:$0xff]   ;;  %v522_v5 = vld [vmem:[%s698_s1 + $0x18] sm:$0xff]   ;;  %v528_v6 = vld [vmem:[%s698_s1 + $0x48] sm:$0xff]  }
   0x3   :  { %458 = vmatpush3.bf16.msra.mxu0 %v519_v1  ;;  %478 = vmatpush3.bf16.msra.mxu1 %v527_v4  ;;  %v523_v7 = vld [vmem:[%s698_s1 + $0x20] sm:$0xff]   ;;  %v529_v8 = vld [vmem:[%s698_s1 + $0x50] sm:$0xff]   ;;  %v524_v9 = vld [vmem:[%s698_s1 + $0x28] sm:$0xff]  }
   0x4   :  { %459 = vmatprep.subr.bf16.mxu0 %v543_v0  ;;  %479 = vmatprep.subr.bf16.mxu1 %v543_v0  ;;  %v530_v10 = vld [vmem:[%s698_s1 + $0x58] sm:$0xff]   ;;  %v525_v11 = vld [vmem:[%s698_s1 + $0x30] sm:$0xff]   ;;  %v531_v12 = vld [vmem:[%s698_s1 + $0x60] sm:$0xff]  }
   0x5   :  { %v526_v13 = vld [vmem:[%s698_s1 + $0x38] sm:$0xff]   ;;  %v21_v14 = vld [vmem:[%s699_s0] sm:$0xff]  ;;  %v22_v15 = vld [vmem:[%s699_s0 + $0x8] sm:$0xff] }
   0x6   :  { %v23_v16 = vpack.c.bf16 %v22_v15, %v21_v14  ;;  %v532_v17 = vld [vmem:[%s698_s1 + $0x68] sm:$0xff]   ;;  %v533_v18 = vld [vmem:[%s698_s1 + $0x70] sm:$0xff]   ;;  %v534_v19 = vld [vmem:[%s698_s1 + $0x78] sm:$0xff]  }
   0x7   :  { %460 = vmatpush3.bf16.msra.mxu0 %v520_v2  ;;  %480 = vmatpush3.bf16.msra.mxu1 %v528_v6  ;;  %v535_v20 = vld [vmem:[%s700_s3] sm:$0xff]   ;;  %v536_v21 = vld [vmem:[%s700_s3 + $0x8] sm:$0xff]   ;;  %v537_v22 = vld [vmem:[%s700_s3 + $0x10] sm:$0xff]  }
   0x8   :  { %461 = vmatprep.subr.bf16.mxu0 %v543_v0  ;;  %481 = vmatprep.subr.bf16.mxu1 %v543_v0  ;;  %v538_v23 = vld [vmem:[%s700_s3 + $0x18] sm:$0xff]   ;;  %v539_v24 = vld [vmem:[%s700_s3 + $0x20] sm:$0xff]   ;;  %v540_v37 = vld [vmem:[%s700_s3 + $0x28] sm:$0xff]  }
   0x9   :  { %v386_v25 = vld [vmem:[%s701_s2] ss:$0 sm:$0xff]  ;;  %v541_v38 = vld [vmem:[%s700_s3 + $0x30] sm:$0xff]   ;;  %v542_v39 = vld [vmem:[%s700_s3 + $0x38] sm:$0xff]  }
   0xa   :  { %v412_v40 = vld [vmem:[%s701_s2 + $0x1] ss:$0 sm:$0xff]  ;;  %v421_v52 = vld [vmem:[%s702_s4] ss:$0 sm:$0xff] }
   0xb   :  { %462 = vmatpush3.bf16.msra.mxu0 %v521_v3  ;;  %482 = vmatpush3.bf16.msra.mxu1 %v529_v8 }
   0xc   :  { %463 = vmatprep.subr.bf16.mxu0 %v543_v0  ;;  %483 = vmatprep.subr.bf16.mxu1 %v543_v0 }
   0xf   :  { %464 = vmatpush3.bf16.msra.mxu0 %v522_v5  ;;  %484 = vmatpush3.bf16.msra.mxu1 %v530_v10 }
  0x10   :  { %465 = vmatprep.subr.bf16.mxu0 %v543_v0  ;;  %485 = vmatprep.subr.bf16.mxu1 %v543_v0 }
  0x13   :  { %466 = vmatpush3.bf16.msra.mxu0 %v523_v7  ;;  %486 = vmatpush3.bf16.msra.mxu1 %v531_v12 }
  0x14   :  { %467 = vmatprep.subr.bf16.mxu0 %v543_v0  ;;  %487 = vmatprep.subr.bf16.mxu1 %v543_v0 }
  0x17   :  { %468 = vmatpush3.bf16.msra.mxu0 %v524_v9  ;;  %488 = vmatpush3.bf16.msra.mxu1 %v532_v17 }
  0x18   :  { %469 = vmatprep.subr.bf16.mxu0 %v543_v0  ;;  %489 = vmatprep.subr.bf16.mxu1 %v543_v0 }
  0x1b   :  { %470 = vmatpush3.bf16.msra.mxu0 %v525_v11  ;;  %490 = vmatpush3.bf16.msra.mxu1 %v533_v18 }
  0x1c   :  { %471 = vmatprep.subr.bf16.mxu0 %v543_v0  ;;  %491 = vmatprep.subr.bf16.mxu1 %v543_v0 }
  0x1f   :  { %472 = vmatpush3.bf16.msra.mxu0 %v526_v13  ;;  %492 = vmatpush3.bf16.msra.mxu1 %v534_v19 }
  0x20   :  { %497 = vmatprep.subr.bf16.mxu0 %v543_v0 }
  0x22   :  { %474 = vmatmul.mubr.bf16.vlgmr.msra.gmra.mrb[0].mxu0 %v23_v16 }
  0x23   :  { %513 = vmatprep.mubr.msk.bf16.mxu0 %vm544_vm0, %v543_v0  ;;  %498 = vmatpush3.bf16.msra.mxu0 %v535_v20 }
  0x24   :  { %499 = vmatprep.subr.bf16.mxu0 %v543_v0 }
  0x27   :  { %500 = vmatpush3.bf16.msra.mxu0 %v536_v21 }
  0x28   :  { %501 = vmatprep.subr.bf16.mxu0 %v543_v0 }
  0x2b   :  { %502 = vmatpush3.bf16.msra.mxu0 %v537_v22 }
  0x2c   :  { %503 = vmatprep.subr.bf16.mxu0 %v543_v0 }
  0x2f   :  { %504 = vmatpush3.bf16.msra.mxu0 %v538_v23 }
  0x30   :  { %505 = vmatprep.subr.bf16.mxu0 %v543_v0 }
  0x33   :  { %506 = vmatpush3.bf16.msra.mxu0 %v539_v24 }
  0x34   :  { %507 = vmatprep.subr.bf16.mxu0 %v543_v0 }
  0x37   :  { %508 = vmatpush3.bf16.msra.mxu0 %v540_v37 }
  0x38   :  { %509 = vmatprep.subr.bf16.mxu0 %v543_v0 }
  0x3b   :  { %510 = vmatpush3.bf16.msra.mxu0 %v541_v38 }
  0x3c   :  { %511 = vmatprep.subr.bf16.mxu0 %v543_v0 }
  0x3f   :  { %512 = vmatpush3.bf16.msra.mxu0 %v542_v39 }
  0xf5   :  { %v129_v26 = vpop.f32.mrb[0].mxu0 }
  0xf6   :  { %v130_v27 = vadd.f32 %v386_v25, %v129_v26  ;;  %v475_v28 = vpop.f32.mrb[1].mxu0 }
  0xf7   :  { %v132_v29 = vpop.f32.mrb[2].mxu0 }
  0xf8   :  { %v136_v30 = vmax.f32 %v130_v27, 0.0  ;;  %v133_v31 = vadd.f32 %v386_v25, %v132_v29  ;;  %v476_v32 = vpop.f32.mrb[3].mxu0 }
  0xfa   :  { %v137_v33 = vmax.f32 %v133_v31, 0.0  ;;  %v138_v34 = vadd.f32 %v136_v30, %v21_v14 }
  0xfc   :  { %v139_v35 = vadd.f32 %v137_v33, %v22_v15 }
  0xfe   :  { %v144_v36 = vpack.c.bf16 %v139_v35, %v138_v34 }
 0x100   :  { %494 = vmatmul.mubr.bf16.vlgmr.msra.gmra.mrb[0].mxu1 %v144_v36 }
 0x1d3   :  { %v252_v41 = vpop.f32.mrb[0].mxu1 }
 0x1d4   :  { %v253_v42 = vadd.f32 %v412_v40, %v252_v41  ;;  %v495_v43 = vpop.f32.mrb[1].mxu1 }
 0x1d5   :  { %v255_v44 = vpop.f32.mrb[2].mxu1 }
 0x1d6   :  { %v259_v45 = vmax.f32 %v253_v42, 0.0  ;;  %v256_v46 = vadd.f32 %v412_v40, %v255_v44  ;;  %v496_v47 = vpop.f32.mrb[3].mxu1 }
 0x1d8   :  { %v260_v48 = vmax.f32 %v256_v46, 0.0  ;;  %v261_v49 = vadd.f32 %v259_v45, %v138_v34 }
 0x1da   :  { %v262_v50 = vadd.f32 %v260_v48, %v139_v35 }
 0x1dc   :  { %v267_v51 = vpack.c.bf16 %v262_v50, %v261_v49 }
 0x1de   :  { %514 = vmatmul.mubr.bf16.vlgmr.msra.gmra.mrb[4].mxu0 %v267_v51 }
 0x2b1   :  { %v373_v53 = vpop.f32.mrb[4].mxu0 }
 0x2b2   :  { %v374_v54 = vadd.f32 %v421_v52, %v373_v53  ;;  %v515_v55 = vpop.f32.mrb[5].mxu0 }
 0x2b3   :  { %v376_v56 = vpop.f32.mrb[6].mxu0 }
 0x2b4   :  { %380 = vst [vmem:[%s703_s5] sm:$0xff] %v374_v54  ;;  %v377_v57 = vadd.f32 %v421_v52, %v376_v56  ;;  %v516_v58 = vpop.f32.mrb[7].mxu0 }
 0x2b6   :  { %381 = vst [vmem:[%s703_s5 + $0x8] sm:$0xff] %v377_v57 }

</bundles_post_ra>
